<compile_context>
chip_gen: v7x
topology: tpu7x:2x2x1
jax: 0.10.0
libtpu: 0.0.40
codegen_flags: <defaults>
</compile_context>

<pallas_src>
import jax
import jax.numpy as jnp
from jax.experimental import pallas as pl
from jax.experimental.pallas import tpu as pltpu


def _lora_qkv_kernel(x_ref, w_ref, b_ref, out_ref):
    # Cast x to the weight's compute dtype in-kernel (free VPU work under MXU
    # slack); accumulate on the MXU in f32; add the bias in f32; single
    # lane-dense full-width store.
    x = x_ref[...].astype(w_ref.dtype)
    acc = jnp.dot(x, w_ref[...], preferred_element_type=jnp.float32)
    out_ref[...] = (acc + b_ref[...]).astype(out_ref.dtype)


def _tpu_vmem_bytes(default=64 << 20):
    """Physical VMEM per TensorCore (falls back to 64 MiB if unavailable)."""
    try:
        info = pltpu.get_tpu_info()
        return int(getattr(info, "vmem_capacity_bytes", default))
    except Exception:
        return default


def prepare_params(params, *, alpha=1.0, compute_dtype=jnp.bfloat16):
    """One-time weight preprocessing (merge / transpose / cast).  Cache the result.

    LoRA adapters are folded into the qkv weight (forward-equivalent):
        W_eff^T[:, 0:D)   = Wqkv^T[:, 0:D)   + alpha * WaQ^T @ WbQ^T
        W_eff^T[:, D:2D)  = Wqkv^T[:, D:2D)                       (no 'k' update)
        W_eff^T[:, 2D:3D) = Wqkv^T[:, 2D:3D) + alpha * WaV^T @ WbV^T
    The merge is computed in f32, then cast to compute_dtype.
    """
    w_qkv = jnp.asarray(params["w_qkv"], jnp.float32)   # (3D, D)  nn.Linear layout
    b_qkv = jnp.asarray(params["b_qkv"], jnp.float32)   # (3D,)
    w_a_q = jnp.asarray(params["w_a_q"], jnp.float32)   # (r, D)
    w_b_q = jnp.asarray(params["w_b_q"], jnp.float32)   # (D, r)
    w_a_v = jnp.asarray(params["w_a_v"], jnp.float32)   # (r, D)
    w_b_v = jnp.asarray(params["w_b_v"], jnp.float32)   # (D, r)

    three_d, d = w_qkv.shape
    assert three_d == 3 * d, "w_qkv must be (3*dim, dim)"

    w_eff = w_qkv.T                                      # (D, 3D)
    w_eff = w_eff.at[:, :d].add(alpha * (w_a_q.T @ w_b_q.T))
    w_eff = w_eff.at[:, 2 * d:].add(alpha * (w_a_v.T @ w_b_v.T))

    return {
        "w_eff": w_eff.astype(compute_dtype),            # (D, 3D), compute dtype
        "b_qkv": b_qkv.reshape(1, three_d),               # kept f32
        "dim": d,
    }


def attention_lora_forward(x, prepared, *, tile_n=None, out_dtype=None):
    """x: [B, H, W, D].  Returns [B, H, W, 3*D] (default dtype = compute dtype)."""
    B, H, W, D = x.shape
    assert D == prepared["dim"], "input dim mismatch with prepared params"
    n_qkv = 3 * D
    w_eff = prepared["w_eff"]
    b_qkv = prepared["b_qkv"]
    compute_dtype = w_eff.dtype
    out_dtype = compute_dtype if out_dtype is None else out_dtype

    N = B * H * W
    # No host-side cast or pad: ragged tail is handled by the cdiv grid
    # (Pallas clips the last block's reads/writes to the array bounds).
    x2 = x.reshape(N, D)

    vmem_phys = _tpu_vmem_bytes()
    if tile_n is None:
        # 128-MiB VMEM parts (v5e/v6e): bigger tiles amortize per-step overhead.
        # 64-MiB parts (v7x): keep 256 so f32 temporaries + weights fit.
        tile_n = 512 if vmem_phys >= (100 << 20) else 256
    tile_n = max(8, (tile_n // 8) * 8)            # keep sublane-aligned

    n_tiles = pl.cdiv(N, tile_n)

    xsz = jnp.dtype(x2.dtype).itemsize
    csz = jnp.dtype(compute_dtype).itemsize
    osz = jnp.dtype(out_dtype).itemsize
    # Actual live buffers: double-buffered x/out tiles, (double-buffered)
    # resident weight + bias, f32 accumulator + cast temporaries.
    vmem_est = (
        2 * tile_n * D * xsz              # x tiles (input dtype)
        + 2 * tile_n * n_qkv * osz        # out tiles
        + 2 * D * n_qkv * csz             # merged weight (grid-invariant)
        + 2 * n_qkv * 4                   # bias (f32)
        + 2 * tile_n * n_qkv * 4          # f32 acc + bias-add/cast temp
        + tile_n * D * csz                # in-kernel cast of x
    )
    headroom_cap = max(32 << 20, int(0.75 * vmem_phys))   # never the full 64 MiB on v7x
    vmem_limit = int(min(max(int(1.5 * vmem_est), 32 << 20), headroom_cap))

    full = lambda i: (0, 0)
    out = pl.pallas_call(
        _lora_qkv_kernel,
        out_shape=jax.ShapeDtypeStruct((N, n_qkv), out_dtype),
        grid_spec=pltpu.PrefetchScalarGridSpec(
            num_scalar_prefetch=0,
            grid=(n_tiles,),
            in_specs=[
                pl.BlockSpec((tile_n, D), lambda i: (i, 0)),     # x row tile
                pl.BlockSpec((D, n_qkv), full),                  # merged W_eff^T
                pl.BlockSpec((1, n_qkv), full),                  # bias (f32)
            ],
            out_specs=pl.BlockSpec((tile_n, n_qkv), lambda i: (i, 0)),
        ),
        compiler_params=pltpu.CompilerParams(
            dimension_semantics=("parallel",),   # shard row tiles across TCs (v7x)
            vmem_limit_bytes=vmem_limit,
        ),
    )(x2, w_eff, b_qkv)

    return out.reshape(B, H, W, n_qkv)


def _reference(x, params, alpha=1.0):
    B, H, W, D = x.shape
    x2 = x.reshape(-1, D)
    qkv = x2 @ params["w_qkv"].T + params["b_qkv"]
    dq = alpha * (x2 @ params["w_a_q"].T) @ params["w_b_q"].T
    dv = alpha * (x2 @ params["w_a_v"].T) @ params["w_b_v"].T
    out = jnp.concatenate(
        [qkv[:, :D] + dq, qkv[:, D:2 * D], qkv[:, 2 * D:] + dv], axis=-1
    )
    return out.reshape(B, H, W, 3 * D)


if __name__ == "__main__":
    # Small ViT-style token grid: x [B, H, W, dim]
    B, H, W, D = 2, 16, 16, 32
    rank = 4

    key = jax.random.PRNGKey(0)
    k = jax.random.split(key, 8)

    x = jax.random.normal(k[0], (B, H, W, D), dtype=jnp.float32)

    # nn.Linear weight layout: (out_features, in_features).
    # NOTE: reset_parameters() zeros w_b_*; small nonzero values are used so the
    # LoRA path is actually exercised (forward semantics unchanged).
    params = {
        "w_qkv": 0.1 * jax.random.normal(k[1], (3 * D, D), dtype=jnp.float32),
        "b_qkv": 0.1 * jax.random.normal(k[2], (3 * D,), dtype=jnp.float32),
        "w_a_q": 0.1 * jax.random.normal(k[3], (rank, D), dtype=jnp.float32),
        "w_b_q": 0.1 * jax.random.normal(k[4], (D, rank), dtype=jnp.float32),
        "w_a_v": 0.1 * jax.random.normal(k[5], (rank, D), dtype=jnp.float32),
        "w_b_v": 0.1 * jax.random.normal(k[6], (D, rank), dtype=jnp.float32),
    }

    ref = _reference(x, params, alpha=1.0)

    # 1) f32 compute path: tight check vs the unmerged reference.
    prep_f32 = prepare_params(params, alpha=1.0, compute_dtype=jnp.float32)
    out_f32 = jax.block_until_ready(attention_lora_forward(x, prep_f32))
    assert out_f32.shape == (B, H, W, 3 * D)
    assert jnp.allclose(out_f32, ref, atol=1e-4, rtol=1e-4), "f32 mismatch vs reference"

    # 2) bf16 compute path (production fast path, bf16 output): loose tolerance.
    prep_bf16 = prepare_params(params, alpha=1.0, compute_dtype=jnp.bfloat16)
    out_bf16 = jax.block_until_ready(attention_lora_forward(x, prep_bf16))
    assert out_bf16.dtype == jnp.bfloat16
    assert jnp.allclose(out_bf16.astype(jnp.float32), ref, atol=5e-2, rtol=5e-2), \
        "bf16 mismatch vs reference"

    # 3) Ragged token count (exercises the cdiv-grid partial last block).
    x_odd = jax.random.normal(k[7], (2, 5, 7, D), dtype=jnp.float32)
    out_odd = jax.block_until_ready(attention_lora_forward(x_odd, prep_f32))
    ref_odd = _reference(x_odd, params, alpha=1.0)
    assert jnp.allclose(out_odd, ref_odd, atol=1e-4, rtol=1e-4), "ragged mismatch vs reference"

    print("KERNEL_OK")
</pallas_src>

<mosaic_0001>
module attributes {stable_mosaic.version = 11 : i64} {
  func.func @_lora_qkv_kernel(%arg0: i32, %arg1: memref<256x32xf32, #tpu.memory_space<vmem>>, %arg2: memref<32x96xf32, #tpu.memory_space<vmem>>, %arg3: memref<1x96xf32, #tpu.memory_space<vmem>>, %arg4: memref<256x96xf32, #tpu.memory_space<vmem>>) attributes {dimension_semantics = [#tpu.dimension_semantics<parallel>], iteration_bounds = array<i64: 2>, scalar_prefetch = 0 : i64, scratch_operands = 0 : i64, tpu.core_type = #tpu.core_type<tc>, window_params = [{transform_indices = @transform_0, window_bounds = array<i64: 256, 32>}, {pipeline_mode = #tpu.pipeline_mode<synchronous>, transform_indices = @transform_1, window_bounds = array<i64: 32, 96>}, {pipeline_mode = #tpu.pipeline_mode<synchronous>, transform_indices = @transform_2, window_bounds = array<i64: 1, 96>}, {transform_indices = @transform_3, window_bounds = array<i64: 256, 96>}]} {
    %c0 = arith.constant 0 : index
    %c0_0 = arith.constant 0 : index
    %0 = vector.load %arg1[%c0, %c0_0] : memref<256x32xf32, #tpu.memory_space<vmem>>, vector<256x32xf32>
    %c0_1 = arith.constant 0 : index
    %c0_2 = arith.constant 0 : index
    %1 = vector.load %arg2[%c0_1, %c0_2] : memref<32x96xf32, #tpu.memory_space<vmem>>, vector<32x96xf32>
    %cst = arith.constant dense<0.000000e+00> : vector<256x96xf32>
    %2 = tpu.matmul %0, %1, %cst {dimension_numbers = #tpu.dot_dimension_numbers<[1], [0], [0], [1], [0, 0, 1, 1], [], []>} : vector<256x32xf32>, vector<32x96xf32>, vector<256x96xf32> -> vector<256x96xf32>
    %c0_3 = arith.constant 0 : index
    %c0_4 = arith.constant 0 : index
    %3 = vector.load %arg3[%c0_3, %c0_4] : memref<1x96xf32, #tpu.memory_space<vmem>>, vector<1x96xf32>
    %4 = vector.broadcast %3 : vector<1x96xf32> to vector<256x96xf32>
    %5 = arith.addf %2, %4 : vector<256x96xf32>
    %c0_5 = arith.constant 0 : index
    %c0_6 = arith.constant 0 : index
    %6 = vector.load %arg4[%c0_5, %c0_6] : memref<256x96xf32, #tpu.memory_space<vmem>>, vector<256x96xf32>
    tpu.vector_store %arg4[%c0_5, %c0_6], %5 {strides = array<i32>} : memref<256x96xf32, #tpu.memory_space<vmem>>, vector<256x96xf32>,
    return
  }
  func.func @transform_0(%arg0: i32) -> (i32, i32) {
    %c0_i32 = arith.constant 0 : i32
    %c0_i32_0 = arith.constant 0 : i32
    return %arg0, %c0_i32 : i32, i32
  }
  func.func @transform_1(%arg0: i32) -> (i32, i32) {
    %c0_i32 = arith.constant 0 : i32
    %c0_i32_0 = arith.constant 0 : i32
    %c0_i32_1 = arith.constant 0 : i32
    return %c0_i32, %c0_i32_0 : i32, i32
  }
  func.func @transform_2(%arg0: i32) -> (i32, i32) {
    %c0_i32 = arith.constant 0 : i32
    %c0_i32_0 = arith.constant 0 : i32
    %c0_i32_1 = arith.constant 0 : i32
    return %c0_i32, %c0_i32_0 : i32, i32
  }
  func.func @transform_3(%arg0: i32) -> (i32, i32) {
    %c0_i32 = arith.constant 0 : i32
    %c0_i32_0 = arith.constant 0 : i32
    return %arg0, %c0_i32 : i32, i32
  }
}

</mosaic_0001>

<bundles_post_ra>
// kernel: tpu_custom_call.1
= control target key start
LH: loop header
LB: loop body
LE: loop exit
PB: predicated region body
PF: predicated region fallthrough
CT: control target
= control target key end

     0   :  { %s812_s12 = smov 0   ;;  %s1017_s0 = inlined_call_operand.vmem [shape: f32[512,32], index: 0, kind: input, shape index: {}]   ;;  %s1018_s1 = inlined_call_operand.vmem [shape: f32[32,96], index: 1, kind: input, shape index: {}]   ;;  %s1019_s2 = inlined_call_operand.vmem [shape: f32[1,96], index: 2, kind: input, shape index: {}]   ;;  %s1020_s3 = inlined_call_operand.vmem [shape: f32[512,96], index: 3, kind: output, shape index: {}]  }
   0x1 LB: > { %s628_s13 = sadd.s32 4294967295, %s790_s12   ;;  %p632_p0 = scmp.ge.s32.totalorder %s790_s12, 1  ;;  %s790_s12 = sphi %s812_s12, %s13_s12  }
   0x2   : > { %p138_p1 = scmp.lt.s32.totalorder %s790_s12, 3 }
   0x4   : > { %p139_p2 = pnand %p632_p0, %p138_p1 }
   0x5   : > { %v206_v0 = vld [vmem:[%s1018_s1] sm:$0xff] (!%p139_p2)  ;;  %v207_v1 = vld [vmem:[%s1018_s1 + $0x8] sm:$0xff] (!%p139_p2)  ;;  %v208_v2 = vld [vmem:[%s1018_s1 + $0x10] sm:$0xff] (!%p139_p2)  ;;  %s633_s20 = sshll.u32 (!%p139_p2), %s628_s13, 5  ;;  %vm217_vm0 = vcmask (!%p139_p2), 261120   ;;  %vm539_vm1 = vcmask (!%p139_p2), 785408  }
   0x6   : > { %142 = sbr.rel (%p139_p2) target bundleno = 263 (0x107), region = 32  ;;  %v764_v3 = vpack.c.bf16 (!%p139_p2), %v207_v1, %v206_v0  ;;  %v209_v4 = vld [vmem:[%s1018_s1 + $0x18] sm:$0xff] (!%p139_p2)  ;;  %p163_p3 = scmp.lt.s32.totalorder (!%p139_p2), %s633_s20, 63  ;;  %v909_v38 = vld [vmem:[%s1019_s2] ss:$0 sm:$0xff] (!%p139_p2) }
   0x7   : > { %v768_v5 = vpack.c.bf16 (!%p139_p2), %v209_v4, %v208_v2 }
   0x8   : > { %765 = vmatprep.subr.bf16.mxu0 (!%p139_p2), %v764_v3  ;;  %772 = vmatprep.subr.bf16.mxu1 (!%p139_p2), %v764_v3 }
   0x9   : > { %767 = vmatpush3.bf16.msra.mxu0 (!%p139_p2), %v764_v3  ;;  %774 = vmatpush3.bf16.msra.mxu1 (!%p139_p2), %v764_v3 }
   0xa   : > { %769 = vmatprep.subr.bf16.mxu0 (!%p139_p2), %v768_v5  ;;  %773 = vmatprep.subr.bf16.mxu1 (!%p139_p2), %v768_v5 }
   0xd   : > { %s1022_s20 = smov (!%p163_p3, %s633_s20), 63  ;;  %771 = vmatpush3.bf16.msra.mxu0 %v768_v5  ;;  %775 = vmatpush3.bf16.msra.mxu1 %v768_v5 }
   0xe   : > { %s634_s23 = sshll.u32 %s1022_s20, 3 }
   0xf   : > { %s840_s26 = scalar_lea.vmem %s1017_s0, %s634_s23  ;;  %s916_s4 = scalar_lea.vmem %s1020_s3, %s634_s23 }
  0x10   : > { %v174_v6 = vld [vmem:[%s840_s26] sm:$0xff]  ;;  %v175_v8 = vld [vmem:[%s840_s26 + $0x8] sm:$0xff]  ;;  %v176_v10 = vld [vmem:[%s840_s26 + $0x10] sm:$0xff] }
  0x11   : > { %v190_v7 = vld [vmem:[%s840_s26 + $0x80] sm:$0xff]  ;;  %v191_v9 = vld [vmem:[%s840_s26 + $0x88] sm:$0xff]  ;;  %716 = vmatprep.mubr.msk.f32.mxu0 %vm217_vm0, %v174_v6  ;;  %v192_v11 = vld [vmem:[%s840_s26 + $0x90] sm:$0xff] }
  0x12   : > { %740 = vmatprep.mubr.msk.f32.mxu1 %vm217_vm0, %v190_v7  ;;  %717 = vmatmul.mubr.msk.f32.vlgmr.msra.gmra.mrb[0].mxu0 %vm217_vm0, %v175_v8  ;;  %v177_v12 = vld [vmem:[%s840_s26 + $0x18] sm:$0xff]  ;;  %v178_v14 = vld [vmem:[%s840_s26 + $0x20] sm:$0xff]  ;;  %v179_v16 = vld [vmem:[%s840_s26 + $0x28] sm:$0xff] }
  0x13   : > { %741 = vmatmul.mubr.msk.f32.vlgmr.msra.gmra.mrb[0].mxu1 %vm217_vm0, %v191_v9  ;;  %719 = vmatprep.mubr.msk.f32.mxu0 %vm217_vm0, %v176_v10  ;;  %v193_v13 = vld [vmem:[%s840_s26 + $0x98] sm:$0xff]  ;;  %v194_v15 = vld [vmem:[%s840_s26 + $0xa0] sm:$0xff]  ;;  %v195_v17 = vld [vmem:[%s840_s26 + $0xa8] sm:$0xff] }
  0x14   : > { %743 = vmatprep.mubr.msk.f32.mxu1 %vm217_vm0, %v192_v11  ;;  %v180_v18 = vld [vmem:[%s840_s26 + $0x30] sm:$0xff]  ;;  %v181_v20 = vld [vmem:[%s840_s26 + $0x38] sm:$0xff]  ;;  %v182_v22 = vld [vmem:[%s840_s26 + $0x40] sm:$0xff] }
  0x15   : > { %v196_v19 = vld [vmem:[%s840_s26 + $0xb0] sm:$0xff]  ;;  %v197_v21 = vld [vmem:[%s840_s26 + $0xb8] sm:$0xff]  ;;  %v198_v23 = vld [vmem:[%s840_s26 + $0xc0] sm:$0xff] }
  0x16   : > { %720 = vmatmul.mubr.msk.f32.gmra.mrb[2].mxu0 %vm217_vm0, %v177_v12  ;;  %v183_v24 = vld [vmem:[%s840_s26 + $0x48] sm:$0xff]  ;;  %v184_v26 = vld [vmem:[%s840_s26 + $0x50] sm:$0xff]  ;;  %v185_v28 = vld [vmem:[%s840_s26 + $0x58] sm:$0xff] }
  0x17   : > { %744 = vmatmul.mubr.msk.f32.gmra.mrb[2].mxu1 %vm217_vm0, %v193_v13  ;;  %722 = vmatprep.mubr.msk.f32.mxu0 %vm217_vm0, %v178_v14  ;;  %v199_v25 = vld [vmem:[%s840_s26 + $0xc8] sm:$0xff]  ;;  %v200_v27 = vld [vmem:[%s840_s26 + $0xd0] sm:$0xff]  ;;  %v201_v29 = vld [vmem:[%s840_s26 + $0xd8] sm:$0xff] }
  0x18   : > { %746 = vmatprep.mubr.msk.f32.mxu1 %vm217_vm0, %v194_v15  ;;  %v186_v30 = vld [vmem:[%s840_s26 + $0x60] sm:$0xff]  ;;  %v187_v32 = vld [vmem:[%s840_s26 + $0x68] sm:$0xff]  ;;  %v188_v34 = vld [vmem:[%s840_s26 + $0x70] sm:$0xff] }
  0x19   : > { %v202_v31 = vld [vmem:[%s840_s26 + $0xe0] sm:$0xff]  ;;  %v203_v33 = vld [vmem:[%s840_s26 + $0xe8] sm:$0xff]  ;;  %v204_v35 = vld [vmem:[%s840_s26 + $0xf0] sm:$0xff] }
  0x1a   : > { %723 = vmatmul.mubr.msk.f32.gmra.mrb[4].mxu0 %vm217_vm0, %v179_v16  ;;  %v189_v36 = vld [vmem:[%s840_s26 + $0x78] sm:$0xff] }
  0x1b   : > { %747 = vmatmul.mubr.msk.f32.gmra.mrb[4].mxu1 %vm217_vm0, %v195_v17  ;;  %725 = vmatprep.mubr.msk.f32.mxu0 %vm217_vm0, %v180_v18  ;;  %v205_v37 = vld [vmem:[%s840_s26 + $0xf8] sm:$0xff] }
  0x1c   : > { %749 = vmatprep.mubr.msk.f32.mxu1 %vm217_vm0, %v196_v19 }
  0x1e   : > { %726 = vmatmul.mubr.msk.f32.gmra.mrb[6].mxu0 %vm217_vm0, %v181_v20 }
  0x1f   : > { %750 = vmatmul.mubr.msk.f32.gmra.mrb[6].mxu1 %vm217_vm0, %v197_v21  ;;  %728 = vmatprep.mubr.msk.f32.mxu0 %vm217_vm0, %v182_v22 }
  0x20   : > { %752 = vmatprep.mubr.msk.f32.mxu1 %vm217_vm0, %v198_v23 }
  0x22   : > { %729 = vmatmul.mubr.msk.f32.gmra.mrb[8].mxu0 %vm217_vm0, %v183_v24 }
  0x23   : > { %753 = vmatmul.mubr.msk.f32.gmra.mrb[8].mxu1 %vm217_vm0, %v199_v25  ;;  %731 = vmatprep.mubr.msk.f32.mxu0 %vm217_vm0, %v184_v26 }
  0x24   : > { %755 = vmatprep.mubr.msk.f32.mxu1 %vm217_vm0, %v200_v27 }
  0x26   : > { %732 = vmatmul.mubr.msk.f32.gmra.mrb[10].mxu0 %vm217_vm0, %v185_v28 }
  0x27   : > { %756 = vmatmul.mubr.msk.f32.gmra.mrb[10].mxu1 %vm217_vm0, %v201_v29  ;;  %734 = vmatprep.mubr.msk.f32.mxu0 %vm217_vm0, %v186_v30 }
  0x28   : > { %758 = vmatprep.mubr.msk.f32.mxu1 %vm217_vm0, %v202_v31 }
  0x2a   : > { %735 = vmatmul.mubr.msk.f32.gmra.mrb[12].mxu0 %vm217_vm0, %v187_v32 }
  0x2b   : > { %759 = vmatmul.mubr.msk.f32.gmra.mrb[12].mxu1 %vm217_vm0, %v203_v33  ;;  %737 = vmatprep.mubr.msk.f32.mxu0 %vm217_vm0, %v188_v34 }
  0x2c   : > { %761 = vmatprep.mubr.msk.f32.mxu1 %vm217_vm0, %v204_v35 }
  0x2e   : > { %738 = vmatmul.mubr.msk.f32.gmra.mrb[14].mxu0 %vm217_vm0, %v189_v36 }
  0x2f   : > { %762 = vmatmul.mubr.msk.f32.gmra.mrb[14].mxu1 %vm217_vm0, %v205_v37 }
  0xe5   : > { %v718_v39 = vpop.f32.mrb[0].mxu0 }
  0xe6   : > { %v742_v40 = vpop.f32.mrb[0].mxu1  ;;  %v386_v41 = vadd.f32 %v718_v39, %v909_v38  ;;  %v380_v43 = vpop.f32.mrb[1].mxu0 }
  0xe7   : > { %v466_v42 = vadd.f32 %v742_v40, %v909_v38  ;;  %v460_v44 = vpop.f32.mrb[1].mxu1  ;;  %v381_v45 = vadd.f32 %v909_v38, %v380_v43 }
  0xe8   : > { %v461_v46 = vadd.f32 %v909_v38, %v460_v44  ;;  %541 = vst.msk [vmem:[%s916_s4 + $0x8] sm:$0xff] %vm539_vm1, %v386_v41 }
  0xe9   : > { %557 = vst.msk [vmem:[%s916_s4 + $0x88] sm:$0xff] %vm539_vm1, %v466_v42  ;;  %540 = vst.msk [vmem:[%s916_s4] sm:$0xff] %vm539_vm1, %v381_v45  ;;  %v721_v47 = vpop.f32.mrb[2].mxu0 }
  0xea   : > { %556 = vst.msk [vmem:[%s916_s4 + $0x80] sm:$0xff] %vm539_vm1, %v461_v46  ;;  %v745_v48 = vpop.f32.mrb[2].mxu1  ;;  %v396_v49 = vadd.f32 %v721_v47, %v909_v38  ;;  %v390_v51 = vpop.f32.mrb[3].mxu0 }
  0xeb   : > { %v476_v50 = vadd.f32 %v745_v48, %v909_v38  ;;  %v470_v52 = vpop.f32.mrb[3].mxu1  ;;  %v391_v53 = vadd.f32 %v909_v38, %v390_v51 }
  0xec   : > { %v471_v54 = vadd.f32 %v909_v38, %v470_v52  ;;  %543 = vst.msk [vmem:[%s916_s4 + $0x18] sm:$0xff] %vm539_vm1, %v396_v49 }
  0xed   : > { %559 = vst.msk [vmem:[%s916_s4 + $0x98] sm:$0xff] %vm539_vm1, %v476_v50  ;;  %542 = vst.msk [vmem:[%s916_s4 + $0x10] sm:$0xff] %vm539_vm1, %v391_v53  ;;  %v724_v55 = vpop.f32.mrb[4].mxu0 }
  0xee   : > { %558 = vst.msk [vmem:[%s916_s4 + $0x90] sm:$0xff] %vm539_vm1, %v471_v54  ;;  %v748_v56 = vpop.f32.mrb[4].mxu1  ;;  %v406_v57 = vadd.f32 %v724_v55, %v909_v38  ;;  %v400_v59 = vpop.f32.mrb[5].mxu0 }
  0xef   : > { %v486_v58 = vadd.f32 %v748_v56, %v909_v38  ;;  %v480_v60 = vpop.f32.mrb[5].mxu1  ;;  %v401_v61 = vadd.f32 %v909_v38, %v400_v59 }
  0xf0   : > { %v481_v62 = vadd.f32 %v909_v38, %v480_v60  ;;  %545 = vst.msk [vmem:[%s916_s4 + $0x28] sm:$0xff] %vm539_vm1, %v406_v57 }
  0xf1   : > { %561 = vst.msk [vmem:[%s916_s4 + $0xa8] sm:$0xff] %vm539_vm1, %v486_v58  ;;  %544 = vst.msk [vmem:[%s916_s4 + $0x20] sm:$0xff] %vm539_vm1, %v401_v61  ;;  %v727_v63 = vpop.f32.mrb[6].mxu0 }
  0xf2   : > { %560 = vst.msk [vmem:[%s916_s4 + $0xa0] sm:$0xff] %vm539_vm1, %v481_v62  ;;  %v751_v0 = vpop.f32.mrb[6].mxu1  ;;  %v416_v1 = vadd.f32 %v727_v63, %v909_v38  ;;  %v410_v3 = vpop.f32.mrb[7].mxu0 }
  0xf3   : > { %v496_v2 = vadd.f32 %v751_v0, %v909_v38  ;;  %v490_v4 = vpop.f32.mrb[7].mxu1  ;;  %v411_v5 = vadd.f32 %v909_v38, %v410_v3 }
  0xf4   : > { %v491_v6 = vadd.f32 %v909_v38, %v490_v4  ;;  %547 = vst.msk [vmem:[%s916_s4 + $0x38] sm:$0xff] %vm539_vm1, %v416_v1 }
  0xf5   : > { %563 = vst.msk [vmem:[%s916_s4 + $0xb8] sm:$0xff] %vm539_vm1, %v496_v2  ;;  %546 = vst.msk [vmem:[%s916_s4 + $0x30] sm:$0xff] %vm539_vm1, %v411_v5  ;;  %v730_v7 = vpop.f32.mrb[8].mxu0 }
  0xf6   : > { %562 = vst.msk [vmem:[%s916_s4 + $0xb0] sm:$0xff] %vm539_vm1, %v491_v6  ;;  %v754_v8 = vpop.f32.mrb[8].mxu1  ;;  %v426_v9 = vadd.f32 %v730_v7, %v909_v38  ;;  %v420_v11 = vpop.f32.mrb[9].mxu0 }
  0xf7   : > { %v506_v10 = vadd.f32 %v754_v8, %v909_v38  ;;  %v500_v12 = vpop.f32.mrb[9].mxu1  ;;  %v421_v13 = vadd.f32 %v909_v38, %v420_v11 }
  0xf8   : > { %v501_v14 = vadd.f32 %v909_v38, %v500_v12  ;;  %549 = vst.msk [vmem:[%s916_s4 + $0x48] sm:$0xff] %vm539_vm1, %v426_v9 }
  0xf9   : > { %565 = vst.msk [vmem:[%s916_s4 + $0xc8] sm:$0xff] %vm539_vm1, %v506_v10  ;;  %548 = vst.msk [vmem:[%s916_s4 + $0x40] sm:$0xff] %vm539_vm1, %v421_v13  ;;  %v733_v15 = vpop.f32.mrb[10].mxu0 }
  0xfa   : > { %564 = vst.msk [vmem:[%s916_s4 + $0xc0] sm:$0xff] %vm539_vm1, %v501_v14  ;;  %v757_v16 = vpop.f32.mrb[10].mxu1  ;;  %v436_v17 = vadd.f32 %v733_v15, %v909_v38  ;;  %v430_v19 = vpop.f32.mrb[11].mxu0 }
  0xfb   : > { %v516_v18 = vadd.f32 %v757_v16, %v909_v38  ;;  %v510_v20 = vpop.f32.mrb[11].mxu1  ;;  %v431_v21 = vadd.f32 %v909_v38, %v430_v19 }
  0xfc   : > { %v511_v22 = vadd.f32 %v909_v38, %v510_v20  ;;  %551 = vst.msk [vmem:[%s916_s4 + $0x58] sm:$0xff] %vm539_vm1, %v436_v17 }
  0xfd   : > { %567 = vst.msk [vmem:[%s916_s4 + $0xd8] sm:$0xff] %vm539_vm1, %v516_v18  ;;  %550 = vst.msk [vmem:[%s916_s4 + $0x50] sm:$0xff] %vm539_vm1, %v431_v21  ;;  %v736_v23 = vpop.f32.mrb[12].mxu0 }
  0xfe   : > { %566 = vst.msk [vmem:[%s916_s4 + $0xd0] sm:$0xff] %vm539_vm1, %v511_v22  ;;  %v760_v24 = vpop.f32.mrb[12].mxu1  ;;  %v446_v25 = vadd.f32 %v736_v23, %v909_v38  ;;  %v440_v27 = vpop.f32.mrb[13].mxu0 }
  0xff   : > { %v526_v26 = vadd.f32 %v760_v24, %v909_v38  ;;  %v520_v28 = vpop.f32.mrb[13].mxu1  ;;  %v441_v29 = vadd.f32 %v909_v38, %v440_v27 }
 0x100   : > { %v521_v30 = vadd.f32 %v909_v38, %v520_v28  ;;  %553 = vst.msk [vmem:[%s916_s4 + $0x68] sm:$0xff] %vm539_vm1, %v446_v25 }
 0x101   : > { %569 = vst.msk [vmem:[%s916_s4 + $0xe8] sm:$0xff] %vm539_vm1, %v526_v26  ;;  %552 = vst.msk [vmem:[%s916_s4 + $0x60] sm:$0xff] %vm539_vm1, %v441_v29  ;;  %v739_v31 = vpop.f32.mrb[14].mxu0 }
 0x102   : > { %568 = vst.msk [vmem:[%s916_s4 + $0xe0] sm:$0xff] %vm539_vm1, %v521_v30  ;;  %v763_v32 = vpop.f32.mrb[14].mxu1  ;;  %v456_v33 = vadd.f32 %v739_v31, %v909_v38  ;;  %v450_v35 = vpop.f32.mrb[15].mxu0 }
 0x103   : > { %v536_v34 = vadd.f32 %v763_v32, %v909_v38  ;;  %v530_v36 = vpop.f32.mrb[15].mxu1  ;;  %v451_v37 = vadd.f32 %v909_v38, %v450_v35 }
 0x104   : > { %v531_v39 = vadd.f32 %v909_v38, %v530_v36  ;;  %555 = vst.msk [vmem:[%s916_s4 + $0x78] sm:$0xff] %vm539_vm1, %v456_v33 }
 0x105   : > { %571 = vst.msk [vmem:[%s916_s4 + $0xf8] sm:$0xff] %vm539_vm1, %v536_v34  ;;  %554 = vst.msk [vmem:[%s916_s4 + $0x70] sm:$0xff] %vm539_vm1, %v451_v37 }
 0x106   : > { %570 = vst.msk [vmem:[%s916_s4 + $0xf0] sm:$0xff] %vm539_vm1, %v531_v39 }
 0x107 PF: > { %s13_s12 = sadd.s32 1, %s790_s12  }
 0x108   : > { %p10_p4 = scmp.ge.s32.totalorder %s13_s12, 4  }
 0x10a   :  { %12 = sbr.rel (!%p10_p4) target bundleno = 1 (0x1), region = 62 }

</bundles_post_ra>
